<compile_context>
chip_gen: v6e
topology: v6e:2x2x1
jax: 0.10.0
libtpu: 0.0.40
codegen_flags: <defaults>
</compile_context>

<pallas_src>
import jax
import jax.numpy as jnp
from jax import lax
from jax.experimental import pallas as pl
from jax.experimental.pallas import tpu as pltpu


# --------------------------------------------------------------------------------------
# Pallas kernel: fused conv3x3 + GroupNorm(2) + SiLU for a block of BB samples
# --------------------------------------------------------------------------------------
def make_kernel(BB, H, Hpad, W, Cout, eps):
    G = 2                                     # ConvSC uses GroupNorm(2, C_out)
    WC = W * Cout
    inv_n = 1.0 / float(H * W * (Cout // G))  # elements per (sample, group)

    def kernel(x_ref, m_ref, ch_ref, o_ref):
        # x_ref : (BB*Hpad, (W+2)*Cin) bf16  zero-padded, channel-fastest packed rows
        # m_ref : (3, (W+2)*Cin, WC)   bf16  banded conv-weight matrices (one per ky)
        # ch_ref: (4, WC)              f32   rows = [conv bias, gamma, beta, group0 mask]
        # o_ref : (BB, H, WC)          f32   lane-dense output block
        xb = x_ref[...]

        # ---- 3x3 conv: one flat MXU matmul per kernel row (aligned full-row LHS) ----
        r0 = jnp.dot(xb, m_ref[0], preferred_element_type=jnp.float32)  # (BB*Hpad, WC)
        r1 = jnp.dot(xb, m_ref[1], preferred_element_type=jnp.float32)
        r2 = jnp.dot(xb, m_ref[2], preferred_element_type=jnp.float32)

        chv = ch_ref[...]                       # (4, WC) f32, hoisted
        bias = chv[0:1, :]
        gamma = chv[1:2, :]
        beta = chv[2:3, :]
        g0 = chv[3:4, :]                        # 1.0 where channel belongs to group 0
        g1 = 1.0 - g0

        # ---- per-sample epilogue: row shifts, GroupNorm(2), affine, SiLU ------------
        for b in range(BB):                     # static unroll, BB is small
            r = b * Hpad                        # 8-aligned per-sample row base
            z = (r0[r:r + H, :]
                 + r1[r + 1:r + 1 + H, :]
                 + r2[r + 2:r + 2 + H, :]
                 + bias)                        # (H, WC) conv output + bias

            # Reduce first (sublane reduce over H), mask the small (1, WC) vectors after.
            colsum = jnp.sum(z, axis=0, keepdims=True)        # (1, WC)
            colsqr = jnp.sum(z * z, axis=0, keepdims=True)    # (1, WC)
            s_all = jnp.sum(colsum)
            q_all = jnp.sum(colsqr)
            s0 = jnp.sum(colsum * g0)
            q0 = jnp.sum(colsqr * g0)
            m0 = s0 * inv_n
            m1 = (s_all - s0) * inv_n
            # NOTE: one-pass variance (E[z^2]-E[z]^2); fine at these magnitudes.
            v0 = q0 * inv_n - m0 * m0
            v1 = (q_all - q0) * inv_n - m1 * m1

            mean = g0 * m0 + g1 * m1                          # (1, WC)
            var = g0 * v0 + g1 * v1
            scale = lax.rsqrt(var + eps) * gamma              # fold norm + affine
            shift = beta - mean * scale
            y = z * scale + shift                             # one FMA per element
            o_ref[b] = (y * jax.nn.sigmoid(y)).astype(o_ref.dtype)   # SiLU, lane-dense store

    return kernel


def _pick_block_b(B):
    # Largest small divisor of B that still leaves >= 2 grid steps (both v7x TCs busy).
    for bb in (8, 4, 2):
        if B % bb == 0 and B // bb >= 2:
            return bb
    return 1 if B > 1 else B


# --------------------------------------------------------------------------------------
# Wrapper: layout plumbing (NCHW <-> packed), on-device banded-weight build, pallas_call
# --------------------------------------------------------------------------------------
def convsc_pallas(x_nchw, conv_w, conv_b, gamma, beta, *, eps=1e-5,
                  block_b=None, matmul_dtype=jnp.bfloat16, out_dtype=jnp.float32):
    B, Cin, H, W = x_nchw.shape
    Cout, Cin2, kh, kw = conv_w.shape
    assert (Cin2, kh, kw) == (Cin, 3, 3), "only the 3x3 / stride=1 ConvSC path is implemented"
    assert Cout % 2 == 0, "GroupNorm(2) requires an even number of output channels"

    BB = block_b if block_b is not None else _pick_block_b(B)
    assert B % BB == 0
    nblk = B // BB
    Hp = H + 2
    Hpad = ((Hp + 7) // 8) * 8                 # per-sample rows, padded to a sublane multiple
    K = (W + 2) * Cin
    WC = W * Cout                              # best perf when WC is a multiple of 128

    # ---- layout plumbing (would live at the model boundary when stacking layers) ----
    x = jnp.transpose(x_nchw, (0, 2, 3, 1))                        # (B, H, W, Cin)
    x = jnp.pad(x, ((0, 0), (1, 1 + Hpad - Hp), (1, 1), (0, 0)))   # (B, Hpad, W+2, Cin)
    x = x.reshape(B * Hpad, K).astype(matmul_dtype)                # channel-fastest packed rows

    # ---- banded conv weights built on device with one einsum (no host loops) --------
    # m[ky, (w+kx)*Cin + ci, w*Cout + co] = conv_w[co, ci, ky, kx]
    S = jnp.stack([jnp.eye(W + 2, W, k=-kx, dtype=jnp.float32) for kx in range(3)])  # (3, W+2, W)
    m = jnp.einsum("xpw,oiyx->ypiwo", S, conv_w.astype(jnp.float32))  # (3, W+2, Cin, W, Cout)
    m = m.reshape(3, K, WC).astype(matmul_dtype)

    # Per-lane packed channel vectors (period Cout along the lane axis), one operand.
    ch = jnp.stack([
        jnp.tile(conv_b.astype(jnp.float32), W),
        jnp.tile(gamma.astype(jnp.float32), W),
        jnp.tile(beta.astype(jnp.float32), W),
        jnp.tile((jnp.arange(Cout) < Cout // 2).astype(jnp.float32), W),
    ])                                                             # (4, WC)

    kernel = make_kernel(BB, H, Hpad, W, Cout, eps)
    out = pl.pallas_call(
        kernel,
        out_shape=jax.ShapeDtypeStruct((B, H, WC), out_dtype),
        grid=(nblk,),
        in_specs=[
            pl.BlockSpec((BB * Hpad, K), lambda i: (i, 0)),        # x rows for this batch block
            pl.BlockSpec((3, K, WC), lambda i: (0, 0, 0)),         # banded weights (grid-invariant)
            pl.BlockSpec((4, WC), lambda i: (0, 0)),               # packed channel vectors
        ],
        out_specs=pl.BlockSpec((BB, H, WC), lambda i: (i, 0, 0)),
        compiler_params=pltpu.CompilerParams(
            dimension_semantics=("parallel",),                     # batch blocks -> both TCs
            vmem_limit_bytes=32 * 1024 * 1024,
        ),
    )(x, m, ch)

    out = out.reshape(B, H, W, Cout)                               # unpack lanes
    return jnp.transpose(out, (0, 3, 1, 2))                        # NHWC -> NCHW


# --------------------------------------------------------------------------------------
# Pure-JAX reference (PyTorch ConvSC semantics, NCHW) for correctness checking
# --------------------------------------------------------------------------------------
def reference_forward(x, conv_w, conv_b, gamma, beta, *, eps=1e-5, matmul_dtype=jnp.float32):
    dn = ("NCHW", "OIHW", "NCHW")
    y = lax.conv_general_dilated(
        x.astype(matmul_dtype), conv_w.astype(matmul_dtype), (1, 1), [(1, 1), (1, 1)],
        dimension_numbers=dn, preferred_element_type=jnp.float32)
    y = y + conv_b[None, :, None, None]
    B, C, H, W = y.shape
    G = 2
    yg = y.reshape(B, G, (C // G) * H * W)
    mean = yg.mean(axis=2, keepdims=True)
    var = yg.var(axis=2, keepdims=True)                 # biased, like nn.GroupNorm
    yn = ((yg - mean) * lax.rsqrt(var + eps)).reshape(B, C, H, W)
    yn = yn * gamma[None, :, None, None] + beta[None, :, None, None]
    return yn * jax.nn.sigmoid(yn)                      # SiLU


# --------------------------------------------------------------------------------------
# Deterministic example run
# --------------------------------------------------------------------------------------
if __name__ == "__main__":
    B, Cin, Cout, H, W = 4, 4, 8, 16, 16     # W*Cout == 128 -> fully lane-dense output

    key = jax.random.PRNGKey(0)
    kx_, kw_, kb_, kg_, kbe_ = jax.random.split(key, 5)
    x = jax.random.normal(kx_, (B, Cin, H, W), jnp.float32)            # NCHW, like PyTorch
    conv_w = 0.1 * jax.random.normal(kw_, (Cout, Cin, 3, 3), jnp.float32)
    conv_b = 0.1 * jax.random.normal(kb_, (Cout,), jnp.float32)
    gamma = 1.0 + 0.1 * jax.random.normal(kg_, (Cout,), jnp.float32)
    beta = 0.1 * jax.random.normal(kbe_, (Cout,), jnp.float32)

    out = jax.block_until_ready(convsc_pallas(x, conv_w, conv_b, gamma, beta))
    assert out.shape == (B, Cout, H, W)

    # (1) tight check vs. a reference with matching precision (bf16 matmul, f32 accumulate)
    ref_bf16 = jax.block_until_ready(
        reference_forward(x, conv_w, conv_b, gamma, beta, matmul_dtype=jnp.bfloat16))
    err_bf16 = float(jnp.max(jnp.abs(out - ref_bf16)))
    assert jnp.allclose(out, ref_bf16, atol=2e-3, rtol=2e-3), err_bf16

    # (2) sanity check vs. the full-f32 PyTorch-equivalent reference (bf16 matmul noise only)
    ref_f32 = jax.block_until_ready(reference_forward(x, conv_w, conv_b, gamma, beta))
    err_f32 = float(jnp.max(jnp.abs(out - ref_f32)))
    assert jnp.allclose(out, ref_f32, atol=5e-2, rtol=5e-2), err_f32

    print("KERNEL_OK")
</pallas_src>

<mosaic_0001>
module attributes {stable_mosaic.version = 11 : i64} {
  func.func @kernel(%arg0: i32, %arg1: memref<48x72xbf16, #tpu.memory_space<vmem>>, %arg2: memref<3x72x128xbf16, #tpu.memory_space<vmem>>, %arg3: memref<4x128xf32, #tpu.memory_space<vmem>>, %arg4: memref<2x16x128xf32, #tpu.memory_space<vmem>>) attributes {dimension_semantics = [#tpu.dimension_semantics<parallel>], iteration_bounds = array<i64: 2>, scalar_prefetch = 0 : i64, scratch_operands = 0 : i64, tpu.core_type = #tpu.core_type<tc>, window_params = [{transform_indices = @transform_0, window_bounds = array<i64: 48, 72>}, {pipeline_mode = #tpu.pipeline_mode<synchronous>, transform_indices = @transform_1, window_bounds = array<i64: 3, 72, 128>}, {pipeline_mode = #tpu.pipeline_mode<synchronous>, transform_indices = @transform_2, window_bounds = array<i64: 4, 128>}, {transform_indices = @transform_3, window_bounds = array<i64: 2, 16, 128>}]} {
    %c0 = arith.constant 0 : index
    %c0_0 = arith.constant 0 : index
    %0 = vector.load %arg1[%c0, %c0_0] : memref<48x72xbf16, #tpu.memory_space<vmem>>, vector<48x72xbf16>
    %c0_1 = arith.constant 0 : index
    %c0_2 = arith.constant 0 : index
    %c0_3 = arith.constant 0 : index
    %1 = vector.load %arg2[%c0_1, %c0_2, %c0_3] : memref<3x72x128xbf16, #tpu.memory_space<vmem>>, vector<1x72x128xbf16>
    %2 = vector.shape_cast %1 : vector<1x72x128xbf16> to vector<72x128xbf16>
    %cst = arith.constant dense<0.000000e+00> : vector<48x128xf32>
    %3 = tpu.matmul %0, %2, %cst {dimension_numbers = #tpu.dot_dimension_numbers<[1], [0], [0], [1], [0, 0, 1, 1], [], []>} : vector<48x72xbf16>, vector<72x128xbf16>, vector<48x128xf32> -> vector<48x128xf32>
    %c1 = arith.constant 1 : index
    %c0_4 = arith.constant 0 : index
    %c0_5 = arith.constant 0 : index
    %4 = vector.load %arg2[%c1, %c0_4, %c0_5] : memref<3x72x128xbf16, #tpu.memory_space<vmem>>, vector<1x72x128xbf16>
    %5 = vector.shape_cast %4 : vector<1x72x128xbf16> to vector<72x128xbf16>
    %cst_6 = arith.constant dense<0.000000e+00> : vector<48x128xf32>
    %6 = tpu.matmul %0, %5, %cst_6 {dimension_numbers = #tpu.dot_dimension_numbers<[1], [0], [0], [1], [0, 0, 1, 1], [], []>} : vector<48x72xbf16>, vector<72x128xbf16>, vector<48x128xf32> -> vector<48x128xf32>
    %c2 = arith.constant 2 : index
    %c0_7 = arith.constant 0 : index
    %c0_8 = arith.constant 0 : index
    %7 = vector.load %arg2[%c2, %c0_7, %c0_8] : memref<3x72x128xbf16, #tpu.memory_space<vmem>>, vector<1x72x128xbf16>
    %8 = vector.shape_cast %7 : vector<1x72x128xbf16> to vector<72x128xbf16>
    %cst_9 = arith.constant dense<0.000000e+00> : vector<48x128xf32>
    %9 = tpu.matmul %0, %8, %cst_9 {dimension_numbers = #tpu.dot_dimension_numbers<[1], [0], [0], [1], [0, 0, 1, 1], [], []>} : vector<48x72xbf16>, vector<72x128xbf16>, vector<48x128xf32> -> vector<48x128xf32>
    %c0_10 = arith.constant 0 : index
    %c0_11 = arith.constant 0 : index
    %10 = vector.load %arg3[%c0_10, %c0_11] : memref<4x128xf32, #tpu.memory_space<vmem>>, vector<4x128xf32>
    %11 = vector.extract_strided_slice %10 {offsets = [0, 0], sizes = [1, 128], strides = [1, 1]} : vector<4x128xf32> to vector<1x128xf32>
    %12 = vector.extract_strided_slice %10 {offsets = [1, 0], sizes = [1, 128], strides = [1, 1]} : vector<4x128xf32> to vector<1x128xf32>
    %13 = vector.extract_strided_slice %10 {offsets = [2, 0], sizes = [1, 128], strides = [1, 1]} : vector<4x128xf32> to vector<1x128xf32>
    %14 = vector.extract_strided_slice %10 {offsets = [3, 0], sizes = [1, 128], strides = [1, 1]} : vector<4x128xf32> to vector<1x128xf32>
    %cst_12 = arith.constant 1.000000e+00 : f32
    %15 = vector.broadcast %cst_12 : f32 to vector<1x128xf32>
    %16 = arith.subf %15, %14 : vector<1x128xf32>
    %17 = vector.extract_strided_slice %3 {offsets = [0, 0], sizes = [16, 128], strides = [1, 1]} : vector<48x128xf32> to vector<16x128xf32>
    %18 = vector.extract_strided_slice %6 {offsets = [1, 0], sizes = [16, 128], strides = [1, 1]} : vector<48x128xf32> to vector<16x128xf32>
    %19 = arith.addf %17, %18 : vector<16x128xf32>
    %20 = vector.extract_strided_slice %9 {offsets = [2, 0], sizes = [16, 128], strides = [1, 1]} : vector<48x128xf32> to vector<16x128xf32>
    %21 = arith.addf %19, %20 : vector<16x128xf32>
    %22 = vector.broadcast %11 : vector<1x128xf32> to vector<16x128xf32>
    %23 = arith.addf %21, %22 : vector<16x128xf32>
    %cst_13 = arith.constant dense<0.000000e+00> : vector<128xf32>
    %24 = vector.multi_reduction <add>, %23, %cst_13 [0] : vector<16x128xf32> to vector<128xf32>
    %25 = vector.shape_cast %24 : vector<128xf32> to vector<1x128xf32>
    %26 = arith.mulf %23, %23 : vector<16x128xf32>
    %cst_14 = arith.constant dense<0.000000e+00> : vector<128xf32>
    %27 = vector.multi_reduction <add>, %26, %cst_14 [0] : vector<16x128xf32> to vector<128xf32>
    %28 = vector.shape_cast %27 : vector<128xf32> to vector<1x128xf32>
    %29 = vector.shape_cast %25 : vector<1x128xf32> to vector<1x1x128xf32>
    %cst_15 = arith.constant dense<0.000000e+00> : vector<1xf32>
    %30 = vector.multi_reduction <add>, %29, %cst_15 [1, 2] : vector<1x1x128xf32> to vector<1xf32>
    %31 = vector.shape_cast %30 : vector<1xf32> to vector<1x1x1xf32>
    %32 = vector.extract %31[0, 0, 0] : f32 from vector<1x1x1xf32>
    %33 = vector.shape_cast %28 : vector<1x128xf32> to vector<1x1x128xf32>
    %cst_16 = arith.constant dense<0.000000e+00> : vector<1xf32>
    %34 = vector.multi_reduction <add>, %33, %cst_16 [1, 2] : vector<1x1x128xf32> to vector<1xf32>
    %35 = vector.shape_cast %34 : vector<1xf32> to vector<1x1x1xf32>
    %36 = vector.extract %35[0, 0, 0] : f32 from vector<1x1x1xf32>
    %37 = arith.mulf %25, %14 : vector<1x128xf32>
    %38 = vector.shape_cast %37 : vector<1x128xf32> to vector<1x1x128xf32>
    %cst_17 = arith.constant dense<0.000000e+00> : vector<1xf32>
    %39 = vector.multi_reduction <add>, %38, %cst_17 [1, 2] : vector<1x1x128xf32> to vector<1xf32>
    %40 = vector.shape_cast %39 : vector<1xf32> to vector<1x1x1xf32>
    %41 = vector.extract %40[0, 0, 0] : f32 from vector<1x1x1xf32>
    %42 = arith.mulf %28, %14 : vector<1x128xf32>
    %43 = vector.shape_cast %42 : vector<1x128xf32> to vector<1x1x128xf32>
    %cst_18 = arith.constant dense<0.000000e+00> : vector<1xf32>
    %44 = vector.multi_reduction <add>, %43, %cst_18 [1, 2] : vector<1x1x128xf32> to vector<1xf32>
    %45 = vector.shape_cast %44 : vector<1xf32> to vector<1x1x1xf32>
    %46 = vector.extract %45[0, 0, 0] : f32 from vector<1x1x1xf32>
    %cst_19 = arith.constant 9.765625E-4 : f32
    %47 = arith.mulf %41, %cst_19 : f32
    %48 = arith.subf %32, %41 : f32
    %cst_20 = arith.constant 9.765625E-4 : f32
    %49 = arith.mulf %48, %cst_20 : f32
    %cst_21 = arith.constant 9.765625E-4 : f32
    %50 = arith.mulf %46, %cst_21 : f32
    %51 = arith.mulf %47, %47 : f32
    %52 = arith.subf %50, %51 : f32
    %53 = arith.subf %36, %46 : f32
    %cst_22 = arith.constant 9.765625E-4 : f32
    %54 = arith.mulf %53, %cst_22 : f32
    %55 = arith.mulf %49, %49 : f32
    %56 = arith.subf %54, %55 : f32
    %57 = vector.broadcast %47 : f32 to vector<1x128xf32>
    %58 = arith.mulf %14, %57 : vector<1x128xf32>
    %59 = vector.broadcast %49 : f32 to vector<1x128xf32>
    %60 = arith.mulf %16, %59 : vector<1x128xf32>
    %61 = arith.addf %58, %60 : vector<1x128xf32>
    %62 = vector.broadcast %52 : f32 to vector<1x128xf32>
    %63 = arith.mulf %14, %62 : vector<1x128xf32>
    %64 = vector.broadcast %56 : f32 to vector<1x128xf32>
    %65 = arith.mulf %16, %64 : vector<1x128xf32>
    %66 = arith.addf %63, %65 : vector<1x128xf32>
    %cst_23 = arith.constant 9.99999974E-6 : f32
    %67 = vector.broadcast %cst_23 : f32 to vector<1x128xf32>
    %68 = arith.addf %66, %67 : vector<1x128xf32>
    %69 = math.rsqrt %68 : vector<1x128xf32>
    %70 = arith.mulf %69, %12 : vector<1x128xf32>
    %71 = arith.mulf %61, %70 : vector<1x128xf32>
    %72 = arith.subf %13, %71 : vector<1x128xf32>
    %73 = vector.broadcast %70 : vector<1x128xf32> to vector<16x128xf32>
    %74 = arith.mulf %23, %73 : vector<16x128xf32>
    %75 = vector.broadcast %72 : vector<1x128xf32> to vector<16x128xf32>
    %76 = arith.addf %74, %75 : vector<16x128xf32>
    %77 = arith.negf %76 : vector<16x128xf32>
    %78 = math.exp %77 : vector<16x128xf32>
    %cst_24 = arith.constant 1.000000e+00 : f32
    %79 = vector.broadcast %cst_24 : f32 to vector<16x128xf32>
    %80 = arith.addf %79, %78 : vector<16x128xf32>
    %81 = arith.divf %79, %80 : vector<16x128xf32>
    %82 = arith.mulf %76, %81 : vector<16x128xf32>
    %c0_25 = arith.constant 0 : index
    %c0_26 = arith.constant 0 : index
    %c0_27 = arith.constant 0 : index
    %83 = vector.load %arg4[%c0_25, %c0_26, %c0_27] : memref<2x16x128xf32, #tpu.memory_space<vmem>>, vector<1x16x128xf32>
    %84 = vector.shape_cast %83 : vector<1x16x128xf32> to vector<16x128xf32>
    %85 = vector.shape_cast %82 : vector<16x128xf32> to vector<1x16x128xf32>
    tpu.vector_store %arg4[%c0_25, %c0_26, %c0_27], %85 {strides = array<i32>} : memref<2x16x128xf32, #tpu.memory_space<vmem>>, vector<1x16x128xf32>,
    %86 = vector.extract_strided_slice %3 {offsets = [24, 0], sizes = [16, 128], strides = [1, 1]} : vector<48x128xf32> to vector<16x128xf32>
    %87 = vector.extract_strided_slice %6 {offsets = [25, 0], sizes = [16, 128], strides = [1, 1]} : vector<48x128xf32> to vector<16x128xf32>
    %88 = arith.addf %86, %87 : vector<16x128xf32>
    %89 = vector.extract_strided_slice %9 {offsets = [26, 0], sizes = [16, 128], strides = [1, 1]} : vector<48x128xf32> to vector<16x128xf32>
    %90 = arith.addf %88, %89 : vector<16x128xf32>
    %91 = vector.broadcast %11 : vector<1x128xf32> to vector<16x128xf32>
    %92 = arith.addf %90, %91 : vector<16x128xf32>
    %cst_28 = arith.constant dense<0.000000e+00> : vector<128xf32>
    %93 = vector.multi_reduction <add>, %92, %cst_28 [0] : vector<16x128xf32> to vector<128xf32>
    %94 = vector.shape_cast %93 : vector<128xf32> to vector<1x128xf32>
    %95 = arith.mulf %92, %92 : vector<16x128xf32>
    %cst_29 = arith.constant dense<0.000000e+00> : vector<128xf32>
    %96 = vector.multi_reduction <add>, %95, %cst_29 [0] : vector<16x128xf32> to vector<128xf32>
    %97 = vector.shape_cast %96 : vector<128xf32> to vector<1x128xf32>
    %98 = vector.shape_cast %94 : vector<1x128xf32> to vector<1x1x128xf32>
    %cst_30 = arith.constant dense<0.000000e+00> : vector<1xf32>
    %99 = vector.multi_reduction <add>, %98, %cst_30 [1, 2] : vector<1x1x128xf32> to vector<1xf32>
    %100 = vector.shape_cast %99 : vector<1xf32> to vector<1x1x1xf32>
    %101 = vector.extract %100[0, 0, 0] : f32 from vector<1x1x1xf32>
    %102 = vector.shape_cast %97 : vector<1x128xf32> to vector<1x1x128xf32>
    %cst_31 = arith.constant dense<0.000000e+00> : vector<1xf32>
    %103 = vector.multi_reduction <add>, %102, %cst_31 [1, 2] : vector<1x1x128xf32> to vector<1xf32>
    %104 = vector.shape_cast %103 : vector<1xf32> to vector<1x1x1xf32>
    %105 = vector.extract %104[0, 0, 0] : f32 from vector<1x1x1xf32>
    %106 = arith.mulf %94, %14 : vector<1x128xf32>
    %107 = vector.shape_cast %106 : vector<1x128xf32> to vector<1x1x128xf32>
    %cst_32 = arith.constant dense<0.000000e+00> : vector<1xf32>
    %108 = vector.multi_reduction <add>, %107, %cst_32 [1, 2] : vector<1x1x128xf32> to vector<1xf32>
    %109 = vector.shape_cast %108 : vector<1xf32> to vector<1x1x1xf32>
    %110 = vector.extract %109[0, 0, 0] : f32 from vector<1x1x1xf32>
    %111 = arith.mulf %97, %14 : vector<1x128xf32>
    %112 = vector.shape_cast %111 : vector<1x128xf32> to vector<1x1x128xf32>
    %cst_33 = arith.constant dense<0.000000e+00> : vector<1xf32>
    %113 = vector.multi_reduction <add>, %112, %cst_33 [1, 2] : vector<1x1x128xf32> to vector<1xf32>
    %114 = vector.shape_cast %113 : vector<1xf32> to vector<1x1x1xf32>
    %115 = vector.extract %114[0, 0, 0] : f32 from vector<1x1x1xf32>
    %cst_34 = arith.constant 9.765625E-4 : f32
    %116 = arith.mulf %110, %cst_34 : f32
    %117 = arith.subf %101, %110 : f32
    %cst_35 = arith.constant 9.765625E-4 : f32
    %118 = arith.mulf %117, %cst_35 : f32
    %cst_36 = arith.constant 9.765625E-4 : f32
    %119 = arith.mulf %115, %cst_36 : f32
    %120 = arith.mulf %116, %116 : f32
    %121 = arith.subf %119, %120 : f32
    %122 = arith.subf %105, %115 : f32
    %cst_37 = arith.constant 9.765625E-4 : f32
    %123 = arith.mulf %122, %cst_37 : f32
    %124 = arith.mulf %118, %118 : f32
    %125 = arith.subf %123, %124 : f32
    %126 = vector.broadcast %116 : f32 to vector<1x128xf32>
    %127 = arith.mulf %14, %126 : vector<1x128xf32>
    %128 = vector.broadcast %118 : f32 to vector<1x128xf32>
    %129 = arith.mulf %16, %128 : vector<1x128xf32>
    %130 = arith.addf %127, %129 : vector<1x128xf32>
    %131 = vector.broadcast %121 : f32 to vector<1x128xf32>
    %132 = arith.mulf %14, %131 : vector<1x128xf32>
    %133 = vector.broadcast %125 : f32 to vector<1x128xf32>
    %134 = arith.mulf %16, %133 : vector<1x128xf32>
    %135 = arith.addf %132, %134 : vector<1x128xf32>
    %cst_38 = arith.constant 9.99999974E-6 : f32
    %136 = vector.broadcast %cst_38 : f32 to vector<1x128xf32>
    %137 = arith.addf %135, %136 : vector<1x128xf32>
    %138 = math.rsqrt %137 : vector<1x128xf32>
    %139 = arith.mulf %138, %12 : vector<1x128xf32>
    %140 = arith.mulf %130, %139 : vector<1x128xf32>
    %141 = arith.subf %13, %140 : vector<1x128xf32>
    %142 = vector.broadcast %139 : vector<1x128xf32> to vector<16x128xf32>
    %143 = arith.mulf %92, %142 : vector<16x128xf32>
    %144 = vector.broadcast %141 : vector<1x128xf32> to vector<16x128xf32>
    %145 = arith.addf %143, %144 : vector<16x128xf32>
    %146 = arith.negf %145 : vector<16x128xf32>
    %147 = math.exp %146 : vector<16x128xf32>
    %cst_39 = arith.constant 1.000000e+00 : f32
    %148 = vector.broadcast %cst_39 : f32 to vector<16x128xf32>
    %149 = arith.addf %148, %147 : vector<16x128xf32>
    %150 = arith.divf %148, %149 : vector<16x128xf32>
    %151 = arith.mulf %145, %150 : vector<16x128xf32>
    %c1_40 = arith.constant 1 : index
    %c0_41 = arith.constant 0 : index
    %c0_42 = arith.constant 0 : index
    %152 = vector.load %arg4[%c1_40, %c0_41, %c0_42] : memref<2x16x128xf32, #tpu.memory_space<vmem>>, vector<1x16x128xf32>
    %153 = vector.shape_cast %152 : vector<1x16x128xf32> to vector<16x128xf32>
    %154 = vector.shape_cast %151 : vector<16x128xf32> to vector<1x16x128xf32>
    tpu.vector_store %arg4[%c1_40, %c0_41, %c0_42], %154 {strides = array<i32>} : memref<2x16x128xf32, #tpu.memory_space<vmem>>, vector<1x16x128xf32>,
    return
  }
  func.func @transform_0(%arg0: i32) -> (i32, i32) {
    %c0_i32 = arith.constant 0 : i32
    %c0_i32_0 = arith.constant 0 : i32
    return %arg0, %c0_i32 : i32, i32
  }
  func.func @transform_1(%arg0: i32) -> (i32, i32, i32) {
    %c0_i32 = arith.constant 0 : i32
    %c0_i32_0 = arith.constant 0 : i32
    %c0_i32_1 = arith.constant 0 : i32
    %c0_i32_2 = arith.constant 0 : i32
    return %c0_i32, %c0_i32_0, %c0_i32_1 : i32, i32, i32
  }
  func.func @transform_2(%arg0: i32) -> (i32, i32) {
    %c0_i32 = arith.constant 0 : i32
    %c0_i32_0 = arith.constant 0 : i32
    %c0_i32_1 = arith.constant 0 : i32
    return %c0_i32, %c0_i32_0 : i32, i32
  }
  func.func @transform_3(%arg0: i32) -> (i32, i32, i32) {
    %c0_i32 = arith.constant 0 : i32
    %c0_i32_0 = arith.constant 0 : i32
    %c0_i32_1 = arith.constant 0 : i32
    return %arg0, %c0_i32, %c0_i32_0 : i32, i32, i32
  }
}

</mosaic_0001>

<bundles_post_ra>
// kernel: tpu_custom_call.1
= control target key start
LH: loop header
LB: loop body
LE: loop exit
PB: predicated region body
PF: predicated region fallthrough
CT: control target
= control target key end

     0   :  { %8 = vsyncpa [#allocation3], 0  ;;  %s1533_s0 = inlined_call_operand.vmem [shape: bf16[96,72], index: 0, kind: input, shape index: {}]   ;;  %s1534_s1 = inlined_call_operand.hbm [shape: bf16[3,72,128], index: 1, kind: input, shape index: {}]   ;;  %s1535_s2 = inlined_call_operand.vmem [shape: f32[4,128], index: 2, kind: input, shape index: {}]   ;;  %s1536_s3 = inlined_call_operand.hbm [shape: f32[4,16,128], index: 3, kind: output, shape index: {}]  }
   0x1   :  { %9 = vsyncpa [#allocation4], 0 }
   0x2   :  { %11 = vsyncpa [#allocation4 + $0x1], 0  ;;  %s1281_s12 = smov 0   ;;  %s1283_s13 = smov 0  }
   0x3   :  { %s1285_s14 = smov 0   ;;  %s1287_s15 = smov 0  }
   0x4 LB: > { %s1302_s16 = sadd.s32 4294967295, %s1251_s15   ;;  %s902_s17 = sadd.s32 4294967294, %s1251_s15   ;;  %s1251_s15 = sphi %s1287_s15, %s1544_s15   ;;  %s1247_s14 = sphi %s1285_s14, %s1543_s14   ;;  %s1243_s13 = sphi %s1283_s13, %s1542_s13   ;;  %s1239_s12 = sphi %s1281_s12, %s1541_s12  }
   0x5   : > { %s1306_s18 = sadd.s32 1, %s1251_s15   ;;  %s92_s19 = sadd.s32 1, %s1247_s14 }
   0x6   : > { %s89_s20 = ssub.s32 %s1251_s15, %s1306_s18  ;;  %p102_p0 = scmp.ne.s32.totalorder %s1247_s14, %s1243_s13 }
   0x7   : > { %p90_p1 = scmp.eq.s32.totalorder %s89_s20, 0  ;;  %p103_p2 = scmp.eq.s32.totalorder %s1302_s16, 1 }
   0x8   : > { %p108_p3 = scmp.ne.s32.totalorder %s1243_s13, %s1239_s12  ;;  %p109_p4 = scmp.eq.s32.totalorder %s902_s17, 1 }
   0x9   : > { %s1317_s21 = scalar_select %p90_p1, %s1247_s14, %s92_s19  }
   0xa   : > { %p1319_p5 = por %p103_p2, %p102_p0  ;;  %p1323_p6 = por %p109_p4, %p108_p3 }
   0xb   : > { %p903_p7 = scmp.ge.s32.totalorder %s1251_s15, 1  ;;  %p116_p8 = scmp.lt.s32.totalorder %s1251_s15, 3 }
   0xc   : > { %s1538_s23 = scalar_select %p1323_p6, 1, 0 }
   0xd   : > { %p1081_p9 = scmp.eq.s32.totalorder %s1302_s16, 0  ;;  %p1330_p10 = pnand %p903_p7, %p116_p8 }
   0xe   : > { %s1253_s25 = smov [#allocation2]  }
   0xf   : > { %s128_s26 = sshll.u32 %s1253_s25, 4  ;;  %p1073_p11 = pneg %p1330_p10  ;;  %s129_s26 = int_to_ptr.vmem [resolvable:$true] %s128_s26 }
  0x10   : > { %s1172_s27 = scalar_lea.vmem %s129_s26, 1728  ;;  %p1180_p3 = scmp.lt.s32.totalorder %s129_s26, %s129_s26 }
  0x11   : > { %p1074_p12 = pnand %p1081_p9, %p1073_p11  ;;  %p1173_p0 = scmp.ne.s32.totalorder %s129_s26, %s1172_s27 }
  0x12   : > { %p1181_p4 = scmp.lt.s32.totalorder %s1172_s27, %s1172_s27 }
  0x13   : > { %p1163_p13 = pneg %p1074_p12 }
  0x14   : > { %p1182_p6 = por %p1181_p4, %p1180_p3 }
  0x15   : > { %p1175_p1 = pnand %p1173_p0, %p1163_p13 }
  0x17   : > { %p1176_p2 = pneg %p1175_p1 }
  0x19   : > { %p1183_p7 = pnand %p1182_p6, %p1176_p2 }
  0x1b   : > { %1186 = shalt.err (!%p1183_p7)
}
  0x1c   : > { %s1254_s28 = smov 64   ;;  %s1255_s29 = smov 4  }
  0x1d   : > { %1076 = dma.hbm_to_vmem [thread:$0]  (!%p1074_p12), %s1534_s1, 1728, %s129_s26, [#allocation3], %s1254_s28, %s1254_s28, %s1255_s29  }
  0x1e   : > { %156 = sbr.rel (%p1330_p10) target bundleno = 606 (0x25e), region = 32 }
  0x23   : > { %1230 = dma.done.wait (%p1081_p9), [#allocation3], 1728  }
  0x24   : > { %1232 = vsyncadd (%p1081_p9), [#allocation3], 4294965568  ;;  %s180_s5 = smul.u32 6, %s1302_s16  ;;  %v1256_v0 = vmov 0.0   ;;  %vm1257_vm0 = vmmov 0   ;;  %vm255_vm1 = vcmask 1043456   ;;  %v536_v41 = vlaneseq }
  0x25   : > { %975 = vmatprep.subr.bf16.mxu0 %v1256_v0  ;;  %997 = vmatprep.subr.bf16.mxu1 %v1256_v0  ;;  %v1123_v1 = vld [vmem:[#allocation2 + $0x20] ss:$0 sps:$4 sm:$0xff]   ;;  %v1124_v2 = vld [vmem:[#allocation2 + $0x44] ss:$0 sps:$4 sm:$0xff]   ;;  %v1125_v5 = vld [vmem:[#allocation2 + $0x18] sm:$0xff]   ;;  %vm245_vm2 = vcmask 588800  }
  0x26   : > { %985 = vmatprep.mubr.msk.bf16.mxu0 %vm1257_vm0, %v1256_v0  ;;  %1007 = vmatprep.mubr.msk.bf16.mxu1 %vm1257_vm0, %v1256_v0  ;;  %p181_p6 = scmp.lt.s32.totalorder %s180_s5, 11  ;;  %v257_v3 = vsel %vm255_vm1, %v1123_v1, 0  ;;  %v352_v4 = vsel %vm255_vm1, %v1124_v2, 0  ;;  %v1126_v6 = vld [vmem:[#allocation2 + $0x3c] sm:$0xff]   ;;  %v1127_v7 = vld [vmem:[#allocation2 + $0x10] sm:$0xff]   ;;  %v1129_v9 = vld [vmem:[#allocation2 + $0x8] sm:$0xff]  }
  0x27   : > { %976 = vmatpush3.bf16.msra.mxu0 %v257_v3  ;;  %998 = vmatpush3.bf16.msra.mxu1 %v352_v4  ;;  %v1128_v8 = vld [vmem:[#allocation2 + $0x34] sm:$0xff]   ;;  %v1130_v10 = vld [vmem:[#allocation2 + $0x2c] sm:$0xff]   ;;  %v1131_v11 = vld [vmem:[#allocation2] sm:$0xff]   ;;  %v1406_v46 = vshrl.u32 %v536_v41, 7  ;;  %vm513_vm3 = vcmask 1046528   ;;  %vm526_vm4 = vcmask 1045504  }
  0x28   : > { %s1546_s5 = smov (!%p181_p6, %s180_s5), 11  ;;  %977 = vmatprep.subr.bf16.mxu0 %v1256_v0  ;;  %999 = vmatprep.subr.bf16.mxu1 %v1256_v0  ;;  %v1132_v12 = vld [vmem:[#allocation2 + $0x24] sm:$0xff]   ;;  %v1137_v18 = vld [vmem:[#allocation2 + $0x58] sm:$0xff]   ;;  %v1139_v19 = vld [vmem:[#allocation2 + $0x50] sm:$0xff]   ;;  %vm558_vm5 = vcmask 1040384  }
  0x29   : > { %s909_s6 = sshll.u32 %s1546_s5, 2  ;;  %v1134_v13 = vld [vmem:[#allocation2 + $0x68] ss:$0 sps:$4 sm:$0xff]   ;;  %v1135_v16 = vld [vmem:[#allocation2 + $0x60] sm:$0xff]   ;;  %v538_v54 = vsub.s32 0, %v1406_v46 }
  0x2a   : > { %s1362_s9 = scalar_lea.vmem %s1533_s0, %s909_s6  ;;  %v449_v15 = vsel %vm255_vm1, %v1134_v13, 0  ;;  %v1140_v21 = vld [vmem:[#allocation2 + $0x48] sm:$0xff]   ;;  %v1414_v58 = vld [vmem:[%s1535_s2] sm:$0xf] }
  0x2b   : > { %978 = vmatpush3.bf16.msra.mxu0 %v1125_v5  ;;  %1000 = vmatpush3.bf16.msra.mxu1 %v1126_v6  ;;  %v1133_v14 = vld [vmem:[%s1362_s9] sm:$0xff]   ;;  %v1136_v17 = vld [vmem:[%s1362_s9 + $0x8] sm:$0xff]   ;;  %v1138_v20 = vld [vmem:[%s1362_s9 + $0x10] sm:$0xff]   ;;  %v539_v4 = vrot.slane %v1414_v58, %v538_v54 }
  0x2c   : > { %979 = vmatprep.subr.bf16.mxu0 %v1256_v0  ;;  %1001 = vmatprep.subr.bf16.mxu1 %v1256_v0 }
  0x2f   : > { %980 = vmatpush3.bf16.msra.mxu0 %v1127_v7  ;;  %1002 = vmatpush3.bf16.msra.mxu1 %v1128_v8 }
  0x30   : > { %981 = vmatprep.subr.bf16.mxu0 %v1256_v0  ;;  %1003 = vmatprep.subr.bf16.mxu1 %v1256_v0 }
  0x33   : > { %982 = vmatpush3.bf16.msra.mxu0 %v1129_v9  ;;  %1004 = vmatpush3.bf16.msra.mxu1 %v1130_v10 }
  0x34   : > { %983 = vmatprep.subr.bf16.mxu0 %v1256_v0  ;;  %1005 = vmatprep.subr.bf16.mxu1 %v1256_v0 }
  0x37   : > { %984 = vmatpush3.bf16.msra.mxu0 %v1131_v11  ;;  %1006 = vmatpush3.bf16.msra.mxu1 %v1132_v12 }
  0x38   : > { %1019 = vmatprep.subr.bf16.mxu0 %v1256_v0  ;;  %1041 = vmatprep.subr.bf16.mxu1 %v1256_v0 }
  0x3a   : > { %986 = vmatmul.mubr.msk.bf16.vlgmr.msra.gmra.mxu0 %vm245_vm2, %v1133_v14  ;;  %1008 = vmatmul.mubr.msk.bf16.vlgmr.msra.gmra.mxu1 %vm245_vm2, %v1133_v14 }
  0x3b   : > { %1020 = vmatpush3.bf16.msra.mxu0 %v449_v15  ;;  %1046 = vmatpush3.bf16.msra.mxu1 %v449_v15 }
  0x3c   : > { %1021 = vmatprep.subr.bf16.mxu0 %v1256_v0  ;;  %989 = vmatprep.mubr.msk.bf16.mxu0 %vm1257_vm0, %v1256_v0 }
  0x3d   : > { %1011 = vmatprep.mubr.msk.bf16.mxu1 %vm1257_vm0, %v1256_v0  ;;  %1042 = vmatprep.subr.bf16.mxu1 %v1256_v0 }
  0x3f   : > { %1022 = vmatpush3.bf16.msra.mxu0 %v1135_v16  ;;  %1047 = vmatpush3.bf16.msra.mxu1 %v1135_v16 }
  0x40   : > { %1023 = vmatprep.subr.bf16.mxu0 %v1256_v0  ;;  %1043 = vmatprep.subr.bf16.mxu1 %v1256_v0 }
  0x42   : > { %990 = vmatmul.mubr.msk.bf16.gmra.mxu0 %vm245_vm2, %v1136_v17  ;;  %1012 = vmatmul.mubr.msk.bf16.gmra.mxu1 %vm245_vm2, %v1136_v17 }
  0x43   : > { %1024 = vmatpush3.bf16.msra.mxu0 %v1137_v18  ;;  %1048 = vmatpush3.bf16.msra.mxu1 %v1137_v18 }
  0x44   : > { %993 = vmatprep.mubr.msk.bf16.mxu0 %vm1257_vm0, %v1256_v0  ;;  %1015 = vmatprep.mubr.msk.bf16.mxu1 %vm1257_vm0, %v1256_v0 }
  0x45   : > { %1025 = vmatprep.subr.bf16.mxu0 %v1256_v0  ;;  %1044 = vmatprep.subr.bf16.mxu1 %v1256_v0 }
  0x47   : > { %1026 = vmatpush3.bf16.msra.mxu0 %v1139_v19  ;;  %1049 = vmatpush3.bf16.msra.mxu1 %v1139_v19 }
  0x48   : > { %1027 = vmatprep.subr.bf16.mxu0 %v1256_v0  ;;  %1045 = vmatprep.subr.bf16.mxu1 %v1256_v0 }
  0x4a   : > { %994 = vmatmul.mubr.msk.bf16.gmra.mxu0 %vm245_vm2, %v1138_v20  ;;  %1016 = vmatmul.mubr.msk.bf16.gmra.mxu1 %vm245_vm2, %v1138_v20 }
  0x4b   : > { %1028 = vmatpush3.bf16.msra.mxu0 %v1140_v21  ;;  %1050 = vmatpush3.bf16.msra.mxu1 %v1140_v21 }
  0x4c   : > { %1029 = vmatprep.mubr.msk.bf16.mxu0 %vm1257_vm0, %v1256_v0  ;;  %1033 = vmatprep.mubr.msk.bf16.mxu1 %vm1257_vm0, %v1256_v0 }
  0x52   : > { %1030 = vmatmul.mubr.msk.bf16.vlgmr.msra.gmra.mxu0 %vm245_vm2, %v1133_v14  ;;  %1034 = vmatmul.mubr.msk.bf16.vlgmr.msra.gmra.mxu1 %vm245_vm2, %v1136_v17 }
  0x53   : > { %1037 = vmatprep.mubr.msk.bf16.mxu1 %vm1257_vm0, %v1256_v0 }
  0x5a   : > { %1038 = vmatmul.mubr.msk.bf16.gmra.mxu1 %vm245_vm2, %v1138_v20 }
  0xfa   : > { %v293_v22 = vpop.f32.mrf.mxu0  ;;  %v388_v23 = vpop.f32.mrf.mxu1 }
  0xfb   : > { %v514_v51 = vrot.slane %v388_v23, 1 }
  0xfc   : > { %v987_v24 = vpop.f32.mrf.mxu0  ;;  %v1009_v25 = vpop.f32.mrf.mxu1 }
  0xfe   : > { %v296_v26 = vpop.f32.mrf.mxu0  ;;  %v391_v27 = vpop.f32.mrf.mxu1 }
  0xff   : > { %v515_v47 = vrot.slane %v391_v27, 1 }
 0x100   : > { %v988_v28 = vpop.f32.mrf.mxu0  ;;  %v1010_v29 = vpop.f32.mrf.mxu1 }
 0x101   : > { %v516_v55 = vsel %vm513_vm3, %v514_v51, %v515_v47 }
 0x102   : > { %v301_v30 = vpop.f32.mrf.mxu0  ;;  %v396_v31 = vpop.f32.mrf.mxu1  ;;  %v521_v1 = vadd.f32 %v516_v55, %v293_v22 }
 0x103   : > { %v517_v48 = vrot.slane %v396_v31, 1 }
 0x104   : > { %v991_v32 = vpop.f32.mrf.mxu0  ;;  %v1013_v33 = vpop.f32.mrf.mxu1 }
 0x105   : > { %v518_v56 = vsel %vm513_vm3, %v515_v47, %v517_v48 }
 0x106   : > { %v303_v34 = vpop.f32.mrf.mxu0  ;;  %v399_v35 = vpop.f32.mrf.mxu1  ;;  %v522_v2 = vadd.f32 %v518_v56, %v296_v26 }
 0x107   : > { %v669_v3 = vrot.slane %v399_v35, 1 }
 0x108   : > { %v992_v36 = vpop.f32.mrf.mxu0  ;;  %v1014_v37 = vpop.f32.mrf.mxu1 }
 0x10a   : > { %v308_v38 = vpop.f32.mrf.mxu0  ;;  %v404_v39 = vpop.f32.mrf.mxu1 }
 0x10b   : > { %v670_v59 = vrot.slane %v404_v39, 1 }
 0x10c   : > { %v995_v40 = vpop.f32.mrf.mxu0  ;;  %v1017_v42 = vpop.f32.mrf.mxu1 }
 0x10d   : > { %v671_v10 = vsel %vm513_vm3, %v669_v3, %v670_v59 }
 0x10e   : > { %v311_v43 = vpop.f32.mrf.mxu0  ;;  %v407_v44 = vpop.f32.mrf.mxu1  ;;  %v676_v18 = vadd.f32 %v671_v10, %v303_v34 }
 0x10f   : > { %v672_v6 = vrot.slane %v407_v44, 1 }
 0x110   : > { %v996_v45 = vpop.f32.mrf.mxu0  ;;  %v1018_v49 = vpop.f32.mrf.mxu1 }
 0x111   : > { %v673_v19 = vsel %vm513_vm3, %v670_v59, %v672_v6 }
 0x112   : > { %v485_v50 = vpop.f32.mrf.mxu0  ;;  %v493_v52 = vpop.f32.mrf.mxu1  ;;  %v677_v30 = vadd.f32 %v673_v19, %v308_v38 }
 0x113   : > { %v527_v61 = vrot.slane %v485_v50, 2  ;;  %v530_v62 = vrot.slane %v493_v52, 2 }
 0x114   : > { %v1031_v53 = vpop.f32.mrf.mxu0  ;;  %v1035_v57 = vpop.f32.mrf.mxu1 }
 0x116   : > { %v488_v60 = vpop.f32.mrf.mxu0  ;;  %v496_v0 = vpop.f32.mrf.mxu1 }
 0x117   : > { %v528_v63 = vrot.slane %v488_v60, 2  ;;  %v681_v16 = vrot.slane %v496_v0, 2 }
 0x118   : > { %v1032_v5 = vpop.f32.mrf.mxu0  ;;  %v1036_v9 = vpop.f32.mrf.mxu1 }
 0x119   : > { %v529_v7 = vsel %vm526_vm4, %v527_v61, %v528_v63  ;;  %v531_v8 = vsel %vm526_vm4, %v528_v63, %v530_v62 }
 0x11a   : > { %v534_v11 = vadd.f32 %v529_v7, %v521_v1  ;;  %v535_v12 = vadd.f32 %v531_v8, %v522_v2  ;;  %v501_v13 = vpop.f32.mrf.mxu1 }
 0x11b   : > { %v682_v17 = vrot.slane %v501_v13, 2 }
 0x11c   : > { %v1420_v14 = vadd.f32 %v539_v4, %v534_v11  ;;  %v1422_v15 = vadd.f32 %v539_v4, %v535_v12  ;;  %v1039_v20 = vpop.f32.mrf.mxu1 }
 0x11d   : > { %v683_v21 = vsel %vm526_vm4, %v681_v16, %v682_v17 }
 0x11e   : > { %v542_v22 = vadd.f32 %v1422_v15, %v1420_v14  ;;  %v549_v23 = vmul.f32 %v1420_v14, %v1420_v14  ;;  %v550_v24 = vmul.f32 %v1422_v15, %v1422_v15  ;;  %v688_v25 = vadd.f32 %v683_v21, %v676_v18  ;;  %v504_v26 = vpop.f32.mrf.mxu1 }
 0x11f   : > { %v684_v27 = vrot.slane %v504_v26, 2 }
 0x120   : > { %v543_v28 = vrot.slane %v542_v22, 4  ;;  %v551_v29 = vadd.f32 %v550_v24, %v549_v23  ;;  %v1040_v31 = vpop.f32.mrf.mxu1  ;;  %v1433_v35 = vadd.f32 %v688_v25, %v539_v4 }
 0x121   : > { %v685_v32 = vsel %vm526_vm4, %v682_v17, %v684_v27 }
 0x122   : > { %v544_v33 = vadd.f32 %v543_v28, %v542_v22  ;;  %v552_v34 = vrot.slane %v551_v29, 4  ;;  %v689_v36 = vadd.f32 %v685_v32, %v677_v30  ;;  %v699_v38 = vmul.f32 %v1433_v35, %v1433_v35 }
 0x124   : > { %v545_v37 = vrot.slane %v544_v33, 2  ;;  %v553_v39 = vadd.f32 %v552_v34, %v551_v29  ;;  %v1435_v40 = vadd.f32 %v689_v36, %v539_v4 }
 0x126   : > { %v546_v41 = vadd.f32 %v545_v37, %v544_v33  ;;  %v554_v42 = vrot.slane %v553_v39, 2  ;;  %v692_v43 = vadd.f32 %v1435_v40, %v1433_v35  ;;  %v700_v44 = vmul.f32 %v1435_v40, %v1435_v40 }
 0x128   : > { %v547_v45 = vrot.slane %v546_v41, 1  ;;  %v555_v47 = vadd.f32 %v554_v42, %v553_v39  ;;  %v693_v48 = vrot.slane %v692_v43, 4  ;;  %v701_v49 = vadd.f32 %v700_v44, %v699_v38 }
 0x12a   : > { %v548_v50 = vadd.f32 %v547_v45, %v546_v41  ;;  %v556_v51 = vrot.slane %v555_v47, 1  ;;  %v694_v52 = vadd.f32 %v693_v48, %v692_v43  ;;  %v702_v53 = vrot.slane %v701_v49, 4 }
 0x12c   : > { %v559_v54 = vsel %vm558_vm5, %v548_v50, 0.0  ;;  %v579_v55 = vmul.f32 %v548_v50, %v1414_v58  ;;  %v557_v56 = vadd.f32 %v556_v51, %v555_v47  ;;  %v695_v57 = vrot.slane %v694_v52, 2 }
 0x12d   : > { %560 = vadd.xlane.f32.xlu0 %v559_v54  ;;  %v703_v59 = vadd.f32 %v702_v53, %v701_v49 }
 0x12e   : > { %v581_v60 = vrot.slane %v579_v55, 3  ;;  %v593_v61 = vmul.f32 %v557_v56, %v1414_v58  ;;  %v696_v62 = vadd.f32 %v695_v57, %v694_v52  ;;  %v569_v1 = vsel %vm558_vm5, %v557_v56, 0.0 }
 0x12f   : > { %v704_v63 = vrot.slane %v703_v59, 2 }
 0x130   : > { %v583_v0 = vsel %vm558_vm5, %v581_v60, 0.0  ;;  %v595_v2 = vrot.slane %v593_v61, 3  ;;  %v697_v3 = vrot.slane %v696_v62, 1 }
 0x131   : > { %584 = vadd.xlane.f32.xlu1 %v583_v0  ;;  %570 = vadd.xlane.f32.xlu0 %v569_v1  ;;  %v705_v4 = vadd.f32 %v704_v63, %v703_v59 }
 0x132   : > { %v698_v5 = vadd.f32 %v697_v3, %v696_v62  ;;  %v597_v7 = vsel %vm558_vm5, %v595_v2, 0.0 }
 0x133   : > { %v706_v6 = vrot.slane %v705_v4, 1 }
 0x134   : > { %v708_v8 = vsel %vm558_vm5, %v698_v5, 0.0  ;;  %v728_v10 = vmul.f32 %v698_v5, %v1414_v58 }
 0x135   : > { %598 = vadd.xlane.f32.xlu1 %v597_v7  ;;  %v707_v9 = vadd.f32 %v706_v6, %v705_v4  ;;  %709 = vadd.xlane.f32.xlu0 %v708_v8 }
 0x136   : > { %v730_v11 = vrot.slane %v728_v10, 3 }
 0x137   : > { %v742_v12 = vmul.f32 %v707_v9, %v1414_v58  ;;  %v718_v13 = vsel %vm558_vm5, %v707_v9, 0.0 }
 0x138   : > { %v732_v16 = vsel %vm558_vm5, %v730_v11, 0.0 }
 0x139   : > { %719 = vadd.xlane.f32.xlu1 %v718_v13  ;;  %v744_v17 = vrot.slane %v742_v12, 3  ;;  %733 = vadd.xlane.f32.xlu0 %v732_v16 }
 0x13b   : > { %v746_v18 = vsel %vm558_vm5, %v744_v17, 0.0  ;;  %v509_v17 = vsub.f32 1.0, %v1414_v58 }
 0x13d   : > { %747 = vadd.xlane.f32.xlu1 %v746_v18 }
 0x1b6   : > { %v561_v19 = vpop.xlane.xlu0 %560 }
 0x1b7   : > { %v562_v20 = vrot.slane %v561_v19, 4 }
 0x1b9   : > { %v563_v21 = vadd.f32 %v562_v20, %v561_v19 }
 0x1ba   : > { %v585_v22 = vpop.xlane.xlu1 %584  ;;  %v571_v23 = vpop.xlane.xlu0 %570 }
 0x1bb   : > { %v564_v24 = vrot.slane %v563_v21, 2  ;;  %v586_v25 = vrot.slane %v585_v22, 4  ;;  %v572_v26 = vrot.slane %v571_v23, 4 }
 0x1bd   : > { %v587_v27 = vadd.f32 %v586_v25, %v585_v22  ;;  %v573_v28 = vadd.f32 %v572_v26, %v571_v23  ;;  %v565_v29 = vadd.f32 %v564_v24, %v563_v21 }
 0x1be   : > { %v599_v30 = vpop.xlane.xlu1 %598  ;;  %v710_v34 = vpop.xlane.xlu0 %709 }
 0x1bf   : > { %v588_v31 = vrot.slane %v587_v27, 2  ;;  %v574_v32 = vrot.slane %v573_v28, 2  ;;  %v600_v33 = vrot.slane %v599_v30, 4  ;;  %v566_v36 = vrot.slane %v565_v29, 1 }
 0x1c0   : > { %v711_v37 = vrot.slane %v710_v34, 4 }
 0x1c1   : > { %v601_v39 = vadd.f32 %v600_v33, %v599_v30  ;;  %v567_v41 = vadd.f32 %v566_v36, %v565_v29  ;;  %v575_v42 = vadd.f32 %v574_v32, %v573_v28  ;;  %v589_v43 = vadd.f32 %v588_v31, %v587_v27 }
 0x1c2   : > { %v712_v38 = vadd.f32 %v711_v37, %v710_v34  ;;  %v720_v44 = vpop.xlane.xlu1 %719  ;;  %v734_v48 = vpop.xlane.xlu0 %733  ;;  %v630_v33 = vrot.slane %v1414_v58, 6 }
 0x1c3   : > { %v602_v45 = vrot.slane %v601_v39, 2  ;;  %v721_v47 = vrot.slane %v720_v44, 4  ;;  %1051 = vpush %v567_v41  ;;  %v576_v49 = vrot.slane %v575_v42, 1  ;;  %v590_v50 = vrot.slane %v589_v43, 1 }
 0x1c4   : > { %v713_v51 = vrot.slane %v712_v38, 2  ;;  %v735_v52 = vrot.slane %v734_v48, 4  ;;  %v640_v41 = vsub.s32 3, %v1406_v46 }
 0x1c5   : > { %v722_v53 = vadd.f32 %v721_v47, %v720_v44  ;;  %v577_v54 = vadd.f32 %v576_v49, %v575_v42  ;;  %v591_v55 = vadd.f32 %v590_v50, %v589_v43  ;;  %v603_v56 = vadd.f32 %v602_v45, %v601_v39 }
 0x1c6   : > { %v736_v57 = vadd.f32 %v735_v52, %v734_v48  ;;  %v748_v59 = vpop.xlane.xlu1 %747  ;;  %v714_v60 = vadd.f32 %v713_v51, %v712_v38  ;;  %v646_v45 = vsub.s32 2, %v1406_v46 }
 0x1c7   : > { %v723_v61 = vrot.slane %v722_v53, 2  ;;  %v749_v62 = vrot.slane %v748_v59, 4  ;;  %1053 = vpush %v577_v54  ;;  %v604_v63 = vrot.slane %v603_v56, 1 }
 0x1c8   : > { %v737_v0 = vrot.slane %v736_v57, 2  ;;  %1055 = vpush %v591_v55  ;;  %v715_v1 = vrot.slane %v714_v60, 1 }
 0x1c9   : > { %v750_v2 = vadd.f32 %v749_v62, %v748_v59  ;;  %v605_v3 = vadd.f32 %v604_v63, %v603_v56  ;;  %v724_v4 = vadd.f32 %v723_v61, %v722_v53 }
 0x1ca   : > { %v738_v5 = vadd.f32 %v737_v0, %v736_v57  ;;  %v716_v6 = vadd.f32 %v715_v1, %v714_v60 }
 0x1cb   : > { %v751_v7 = vrot.slane %v750_v2, 2  ;;  %1057 = vpush %v605_v3  ;;  %v725_v8 = vrot.slane %v724_v4, 1 }
 0x1cc   : > { %1059 = vpush %v716_v6  ;;  %v739_v9 = vrot.slane %v738_v5, 1 }
 0x1cd   : > { %v752_v10 = vadd.f32 %v751_v7, %v750_v2  ;;  %v726_v11 = vadd.f32 %v725_v8, %v724_v4 }
 0x1ce   : > { %v740_v12 = vadd.f32 %v739_v9, %v738_v5 }
 0x1cf   : > { %1061 = vpush %v726_v11  ;;  %v753_v13 = vrot.slane %v752_v10, 1 }
 0x1d0   : > { %1063 = vpush %v740_v12 }
 0x1d1   : > { %v754_v16 = vadd.f32 %v753_v13, %v752_v10 }
 0x1d3   : > { %1065 = vpush %v754_v16 }
 0x1f4   : > { %s1052_s17 = spop %1051 }
 0x1f8   : > { %s1054_s19 = spop %1053 }
 0x1f9   : > { %s1056_s20 = spop %1055 }
 0x1fa   : > { %s1455_s24 = smul.f32 0.0009765625, %s1056_s20  ;;  %s608_s25 = ssub.f32 %s1052_s17, %s1056_s20 }
 0x1fc   : > { %s1457_s26 = smul.f32 0.0009765625, %s608_s25  ;;  %s1058_s27 = spop %1057  ;;  %v617_v31 = vstv %s1455_s24 }
 0x1fd   : > { %s611_s28 = smul.f32 %s1455_s24, %s1455_s24  ;;  %s613_s29 = ssub.f32 %s1054_s19, %s1058_s27  ;;  %v618_v34 = vmul.f32 %v617_v31, %v1414_v58 }
 0x1fe   : > { %s615_s30 = smul.f32 %s1457_s26, %s1457_s26  ;;  %s1060_s5 = spop %1059  ;;  %v619_v30 = vstv %s1457_s26 }
 0x1ff   : > { %s610_s4 = smul.f32 0.0009765625, %s1058_s27  ;;  %v620_v32 = vmul.f32 %v619_v30, %v509_v17  ;;  %s177_s24 = sand.u32 1, %s1243_s13  }
 0x200   : > { %s614_s6 = smul.f32 0.0009765625, %s613_s29  ;;  %s1062_s7 = spop %1061 }
 0x201   : > { %s612_s8 = ssub.f32 %s610_s4, %s611_s28  ;;  %s1064_s9 = spop %1063  ;;  %v621_v37 = vadd.f32 %v620_v32, %v618_v34 }
 0x202   : > { %s616_s10 = ssub.f32 %s614_s6, %s615_s30  ;;  %s1463_s11 = smul.f32 0.0009765625, %s1064_s9 }
 0x203   : > { %v622_v18 = vstv %s612_s8  ;;  %s757_s17 = ssub.f32 %s1060_s5, %s1064_s9  ;;  %s908_s26 = sshll.u32 %s177_s24, 5 }
 0x204   : > { %v624_v19 = vstv %s616_s10  ;;  %s760_s20 = smul.f32 %s1463_s11, %s1463_s11  ;;  %s1066_s19 = spop %1065  ;;  %v623_v20 = vmul.f32 %v622_v18, %v1414_v58  ;;  %v766_v38 = vstv %s1463_s11 }
 0x205   : > { %v625_v21 = vmul.f32 %v624_v19, %v509_v17  ;;  %s758_s25 = smul.f32 0.0009765625, %s757_s17  ;;  %s762_s27 = ssub.f32 %s1062_s7, %s1066_s19  ;;  %v767_v49 = vmul.f32 %v766_v38, %v1414_v58 }
 0x206   : > { %s759_s28 = smul.f32 0.0009765625, %s1066_s19  ;;  %s179_s5 = scalar_lea.vmem [#allocation5], %s908_s26 }
 0x207   : > { %v626_v22 = vadd.f32 %v625_v21, %v623_v20  ;;  %s764_s29 = smul.f32 %s758_s25, %s758_s25  ;;  %v768_v42 = vstv %s758_s25  ;;  %s950_s7 = sshll.u32 %s1302_s16, 9 }
 0x208   : > { %s761_s30 = ssub.f32 %s759_s28, %s760_s20  ;;  %s763_s4 = smul.f32 0.0009765625, %s762_s27  ;;  %v769_v44 = vmul.f32 %v768_v42, %v509_v17 }
 0x209   : > { %v627_v23 = vadd.f32 1e-05, %v626_v22  ;;  %s828_s8 = sshll.u32 %s179_s5, 4  ;;  %s1489_s11 = scalar_lea.hbm %s1536_s3, %s950_s7  ;;  %s1491_s8 = int_to_ptr.vmem [resolvable:$true] %s828_s8 }
 0x20a   : > { %s765_s6 = ssub.f32 %s763_s4, %s764_s29  ;;  %v771_v24 = vstv %s761_s30  ;;  %v770_v52 = vadd.f32 %v769_v44, %v767_v49  ;;  %s1493_s17 = scalar_lea.sflag [#allocation4], %s177_s24 }
 0x20b   : > { %1141 = vrsqrt.f32 %v627_v23  ;;  %v772_v26 = vmul.f32 %v771_v24, %v1414_v58  ;;  %s1187_s16 = scalar_lea.vmem %s1491_s8, 512  ;;  %s1258_s20 = smov [#allocation5]  }
 0x20c   : > { %v773_v25 = vstv %s765_s6  ;;  %p1188_p8 = scmp.ne.s32.totalorder %s1491_s8, %s1187_s16  ;;  %s1191_s19 = sshll.u32 %s1258_s20, 4  ;;  %s1192_s19 = int_to_ptr.vmem [resolvable:$false] %s1191_s19 }
 0x20d   : > { %v774_v27 = vmul.f32 %v773_v25, %v509_v17  ;;  %s1193_s25 = scalar_lea.vmem %s1192_s19, 1024  ;;  %p1194_p11 = scmp.lt.s32.totalorder %s1491_s8, %s1192_s19 }
 0x20e   : > { %p1189_p9 = pnand %p1188_p8, %p1319_p5  ;;  %p1195_p12 = scmp.lt.s32.totalorder %s1193_s25, %s1187_s16 }
 0x20f   : > { %v775_v28 = vadd.f32 %v774_v27, %v772_v26 }
 0x210   : > { %p1190_p10 = pneg %p1189_p9  ;;  %p1196_p13 = por %p1195_p12, %p1194_p11 }
 0x211   : > { %v776_v29 = vadd.f32 1e-05, %v775_v28 }
 0x212   : > { %p1197_p0 = pnand %p1196_p13, %p1190_p10 }
 0x213   : > { %1143 = vrsqrt.f32 %v776_v29 }
 0x218   : > { %v1142_v36 = vpop.eup %1141 }
 0x219   : > { %v632_v39 = vmul.f32 %v1142_v36, %v630_v33 }
 0x21b   : > { %v633_v43 = vmul.f32 %v632_v39, %v621_v37  ;;  %v641_v48 = vrot.slane %v632_v39, %v640_v41 }
 0x21d   : > { %v635_v47 = vrot.slane %v633_v43, 1  ;;  %v642_v53 = vmul.f32 %v641_v48, %v1420_v14  ;;  %v643_v54 = vmul.f32 %v641_v48, %v1422_v15 }
 0x21f   : > { %v637_v50 = vsub.f32 %v1414_v58, %v635_v47 }
 0x220   : > { %v1144_v51 = vpop.eup %1143 }
 0x221   : > { %v647_v55 = vrot.slane %v637_v50, %v646_v45  ;;  %v778_v56 = vmul.f32 %v1144_v51, %v630_v33 }
 0x223   : > { %v648_v57 = vadd.f32 %v647_v55, %v642_v53  ;;  %v649_v59 = vadd.f32 %v647_v55, %v643_v54  ;;  %v779_v60 = vmul.f32 %v778_v56, %v770_v52  ;;  %v787_v63 = vrot.slane %v778_v56, %v640_v41 }
 0x225   : > { %v937_v61 = vmul.f32 -1.442695, %v648_v57  ;;  %v938_v62 = vmul.f32 -1.442695, %v649_v59  ;;  %v781_v46 = vrot.slane %v779_v60, 1  ;;  %v788_v1 = vmul.f32 %v787_v63, %v1433_v35 }
 0x226   : > { %v789_v2 = vmul.f32 %v787_v63, %v1435_v40 }
 0x227   : > { %1145 = vpow2.f32 %v937_v61  ;;  %v783_v0 = vsub.f32 %v1414_v58, %v781_v46 }
 0x228   : > { %1147 = vpow2.f32 %v938_v62 }
 0x229   : > { %v793_v14 = vrot.slane %v783_v0, %v646_v45 }
 0x22b   : > { %v794_v3 = vadd.f32 %v793_v14, %v788_v1  ;;  %v795_v15 = vadd.f32 %v793_v14, %v789_v2 }
 0x22d   : > { %v939_v4 = vmul.f32 -1.442695, %v794_v3  ;;  %v940_v5 = vmul.f32 -1.442695, %v795_v15 }
 0x22f   : > { %1149 = vpow2.f32 %v939_v4 }
 0x230   : > { %1151 = vpow2.f32 %v940_v5 }
 0x234   : > { %v1146_v6 = vpop.eup %1145 }
 0x235   : > { %v1148_v7 = vpop.eup %1147  ;;  %v656_v8 = vadd.f32 1.0, %v1146_v6 }
 0x236   : > { %v657_v9 = vadd.f32 1.0, %v1148_v7 }
 0x237   : > { %1153 = vrcp.f32 %v656_v8 }
 0x238   : > { %1155 = vrcp.f32 %v657_v9 }
 0x23c   : > { %v1150_v58 = vpop.eup %1149 }
 0x23d   : > { %v1152_v10 = vpop.eup %1151  ;;  %v802_v35 = vadd.f32 1.0, %v1150_v58 }
 0x23e   : > { %v803_v11 = vadd.f32 1.0, %v1152_v10 }
 0x23f   : > { %1157 = vrcp.f32 %v802_v35 }
 0x240   : > { %1159 = vrcp.f32 %v803_v11 }
 0x244   : > { %v1154_v40 = vpop.eup %1153 }
 0x245   : > { %v1156_v12 = vpop.eup %1155  ;;  %v662_v13 = vmul.f32 %v1154_v40, %v648_v57 }
 0x246   : > { %v663_v16 = vmul.f32 %v1156_v12, %v649_v59 }
 0x247   : > { %664 = vst [vmem:[%s179_s5] sm:$0xff] %v662_v13 }
 0x248   : > { %665 = vst [vmem:[%s179_s5 + $0x8] sm:$0xff] %v663_v16 }
 0x24c   : > { %v1158_v17 = vpop.eup %1157 }
 0x24d   : > { %v1160_v18 = vpop.eup %1159  ;;  %v808_v19 = vmul.f32 %v1158_v17, %v794_v3 }
 0x24e   : > { %v809_v20 = vmul.f32 %v1160_v18, %v795_v15 }
 0x24f   : > { %941 = vst [vmem:[%s179_s5 + $0x10] sm:$0xff] %v808_v19 }
 0x250   : > { %942 = vst [vmem:[%s179_s5 + $0x18] sm:$0xff] %v809_v20 }
 0x251   : > { %1200 = shalt.err (!%p1197_p0)
}
 0x252   : > { %s1201_s27 = scalar_lea.hbm %s1489_s11, 512  ;;  %s1205_s30 = scalar_lea.hbm %s1536_s3, 1024 }
 0x253   : > { %p1202_p1 = scmp.ne.s32.totalorder %s1489_s11, %s1201_s27  ;;  %p1206_p4 = scmp.lt.s32.totalorder %s1489_s11, %s1536_s3 }
 0x254   : > { %p1207_p7 = scmp.lt.s32.totalorder %s1205_s30, %s1201_s27 }
 0x255   : > { %p1203_p2 = pnand %p1202_p1, %p1319_p5 }
 0x256   : > { %p1208_p6 = por %p1207_p7, %p1206_p4 }
 0x257   : > { %p1204_p3 = pneg %p1203_p2 }
 0x259   : > { %p1209_p8 = pnand %p1208_p6, %p1204_p3 }
 0x25b   : > { %1212 = shalt.err (!%p1209_p8)
}
 0x25c   : > { %s1259_s24 = smov 128   ;;  %s1260_s26 = smov 8  }
 0x25d   : > { %1071 = dma.vmem_to_hbm [thread:$0]  (%p1319_p5), %s1491_s8, 512, %s1489_s11, %s1493_s17, %s1259_s24, %s1259_s24, %s1260_s26  }
 0x25e PF: > { %p1083_p9 = scmp.ge.s32.totalorder %s1251_s15, 2  ;;  %s843_s5 = sand.u32 1, %s1239_s12  }
 0x25f   : > { %p1540_p10 = scmp.ne.s32.totalorder %s1538_s23, 0  ;;  %s844_s7 = scalar_lea.sflag [#allocation4], %s843_s5 }
 0x261   : > { %p1078_p11 = pnand %p1083_p9, %p1540_p10 }
 0x263   : > { %p1079_p12 = pneg %p1078_p11 }
 0x265   : > { %1234 = dma.done.wait (%p1079_p12), %s844_s7, 512  }
 0x266   : > { %1236 = vsyncadd (%p1079_p12), %s844_s7, 4294966784  ;;  %p14_p13 = scmp.ge.s32.totalorder %s1306_s18, 4   ;;  %s1541_s12 = smov %s1243_s13 }
 0x267   : > { %s1542_s13 = smov %s1247_s14  ;;  %s1543_s14 = smov %s1317_s21 }
 0x268   : > { %s1544_s15 = smov %s1306_s18  ;;  %16 = sbr.rel (!%p14_p13) target bundleno = 4 (0x4), region = 75 }
 0x26d   :  { %849 = vsyncpa [#allocation3], 1 }
 0x26e   :  { %851 = vsyncpa [#allocation3 + $0x1], 1 }
 0x26f   :  { %852 = vsyncpa [#allocation4], 1 }
 0x270   :  { %854 = vsyncpa [#allocation4 + $0x1], 1 }

</bundles_post_ra>
